<compile_context>
chip_gen: v5e
topology: v5e:2x2
jax: 0.10.0
libtpu: 0.0.40
codegen_flags: <defaults>
</compile_context>

<pallas_src>
import functools

import jax
import jax.numpy as jnp
from jax.experimental import pallas as pl
from jax.experimental.pallas import tpu as pltpu


# ---------------------------------------------------------------------------
# Stage 1: fused 1x1 convs (5 branch projections in one slab + residual conv)
# with packed per-batch partial BN statistics.
# ---------------------------------------------------------------------------
def _stage1_kernel(x_ref, w_br_ref, w_rs_ref, zbr_ref, zrs_ref, stat_ref):
    x = x_ref[...]                                               # (rows, C_in) bf16
    acc_br = jnp.dot(x, w_br_ref[...], preferred_element_type=jnp.float32)
    acc_rs = jnp.dot(x, w_rs_ref[...], preferred_element_type=jnp.float32)
    zbr_ref[...] = acc_br.astype(zbr_ref.dtype)                  # bf16 slab store
    zrs_ref[...] = acc_rs.astype(zrs_ref.dtype)
    stat_ref[...] = jnp.concatenate(
        [jnp.sum(acc_br, axis=0, keepdims=True),
         jnp.sum(acc_br * acc_br, axis=0, keepdims=True),
         jnp.sum(acc_rs, axis=0, keepdims=True),
         jnp.sum(acc_rs * acc_rs, axis=0, keepdims=True)], axis=0)   # (4, C_out)


# ---------------------------------------------------------------------------
# Stage 3: BN1 + ReLU fused with ALL dilated temporal convs (block-diagonal
# per-offset weights, bf16 MXU, f32 accumulation) and the MaxPool branch,
# plus packed per-batch partial BN2 statistics.
# ---------------------------------------------------------------------------
def _stage3_kernel(z_ref, scsh_ref, w_ref, y_ref, stat_ref, a_pad_ref, *,
                   rows, pad_rows, c_out, cb, n_conv, off_rows, pool_rows):
    scsh = scsh_ref[...]                                         # (2, C_out) f32
    a = jnp.maximum(z_ref[...].astype(jnp.float32) * scsh[0:1, :] + scsh[1:2, :],
                    0.0)                                         # (rows, C_out) f32

    # Zero-padded activation scratch in bf16 (row index = t*V + v, so padding P
    # timesteps == padding P*V rows).  Re-zeroed every step so it is correct
    # under megacore sharding (scratch is per-core).
    if pad_rows > 0:
        zeros = jnp.zeros((pad_rows, c_out), jnp.bfloat16)
        a_pad_ref[pl.ds(0, pad_rows), :] = zeros
        a_pad_ref[pl.ds(pad_rows + rows, pad_rows), :] = zeros
    a_pad_ref[pl.ds(pad_rows, rows), :] = a.astype(jnp.bfloat16)

    # Fused dilated temporal convs: one lane-dense (rows, C_out) @ (C_out, C_out)
    # bf16 matmul per distinct (compile-time) tap offset; block-diagonal weights
    # route each branch's channels.  No lane slicing or tap concatenation.
    acc = jnp.zeros((rows, c_out), jnp.float32)
    for i, off in enumerate(off_rows):                           # static unroll
        tap = a_pad_ref[pl.ds(off, rows), :]                     # (rows, C_out) bf16
        acc = acc + jnp.dot(tap, w_ref[i], preferred_element_type=jnp.float32)

    # MaxPool2d((3,1), stride 1, pad 1) branch on the last cb channels.  Zero
    # padding == -inf padding because the pool input is post-ReLU (>= 0).
    p = a_pad_ref[pl.ds(pool_rows[0], rows), :]
    for off in pool_rows[1:]:
        p = jnp.maximum(p, a_pad_ref[pl.ds(off, rows), :])
    is_pool = jax.lax.broadcasted_iota(jnp.int32, (1, c_out), 1) >= n_conv * cb
    # conv acc is exactly zero on the pool channels (block-diag weights), so a
    # masked add selects the pool output there without any lane slicing.
    y = acc + jnp.where(is_pool, p.astype(jnp.float32), 0.0)

    y_ref[...] = y.astype(y_ref.dtype)                           # bf16 slab store
    stat_ref[...] = jnp.concatenate(
        [jnp.sum(y, axis=0, keepdims=True),
         jnp.sum(y * y, axis=0, keepdims=True)], axis=0)         # (2, C_out)


# ---------------------------------------------------------------------------
# Stage 5: branch BN2 + residual BN + residual add + fused NTVC->NCHW transpose
# (single lane-dense (C_out, rows) store per batch element).
# ---------------------------------------------------------------------------
def _stage5_kernel(y_ref, zrs_ref, scsh_ref, o_ref, *, rows, c_out):
    s = scsh_ref[...]                                            # (4, C_out) f32
    v = (y_ref[...].astype(jnp.float32) * s[0:1, :] + s[1:2, :]
         + zrs_ref[...].astype(jnp.float32) * s[2:3, :] + s[3:4, :])  # (rows, C_out)
    # Pad to an (8,128)-aligned tile before the XLU transpose, then slice back.
    rpad = (-rows) % 8
    cpad = (-c_out) % 128
    if rpad:
        v = jnp.concatenate([v, jnp.zeros((rpad, v.shape[1]), v.dtype)], axis=0)
    if cpad:
        v = jnp.concatenate([v, jnp.zeros((v.shape[0], cpad), v.dtype)], axis=1)
    o_ref[...] = v.T[:c_out, :rows]


# ---------------------------------------------------------------------------
# Glue helpers
# ---------------------------------------------------------------------------
def _bn_scale_shift(sum_, ssq, count, gamma, beta, eps):
    mean = sum_ / count
    var = ssq / count - mean * mean       # training-mode (biased) batch variance
    # TODO(synk): E[x^2]-E[x]^2 can lose precision for huge activations; a
    #             shifted / two-pass variance would be more robust.
    scale = gamma / jnp.sqrt(var + eps)
    shift = beta - mean * scale
    return scale, shift


def multiscale_temporal_conv_forward(
        x_nchw, w1, gamma1, beta1, wt, gamma2, beta2, w_res, gamma_r, beta_r, *,
        kernel_size=3, stride=1, dilations=(1, 2, 3, 4), eps=1e-5):
    """Forward of MultiScale_TemporalConv with training-mode BatchNorm stats.

    w1:    (NB, Cb, C_in)    branch 1x1 conv weights (NB = len(dilations)+1)
    wt:    (NB-1, Cb, Cb, K) per-branch temporal conv weights
    w_res: (C_out, C_in)     residual 1x1 conv weight
    gamma1/beta1, gamma2/beta2: (NB, Cb); gamma_r/beta_r: (C_out,)
    Conv biases are omitted (weights_init zeroes them; training-mode BN cancels them).
    """
    assert stride == 1, "TODO(synk): stride > 1 not implemented"
    assert isinstance(kernel_size, int), "TODO(synk): list kernel_size not implemented"

    N, C_in, T, V = x_nchw.shape
    NB, Cb, _ = w1.shape
    C_out = NB * Cb
    K = kernel_size
    K_pool = 3
    n_conv = NB - 1
    rows = T * V
    f32, bf16 = jnp.float32, jnp.bfloat16

    dil = list(dilations)
    pads = [(K + (K - 1) * (d - 1) - 1) // 2 for d in dil]
    effs = [(K - 1) * d + 1 for d in dil]
    assert all(T + 2 * p - e + 1 == T for p, e in zip(pads, effs)), \
        "all branches must preserve T (odd effective kernel, stride 1)"
    P_max = max(pads + [1])              # +1 covers the maxpool padding
    pad_rows = P_max * V

    # ---- glue: layouts & weight packing (cheap, plain JAX) ----
    x_flat = jnp.transpose(x_nchw, (0, 2, 3, 1)).reshape(N, rows, C_in).astype(bf16)
    w_br = jnp.transpose(w1, (2, 0, 1)).reshape(C_in, C_out).astype(bf16)
    w_rs = w_res.T.astype(bf16)

    # One block-diagonal (C_out, C_out) weight per DISTINCT tap offset (static).
    off_ts = sorted({P_max - pads[b] + k * dil[b]
                     for b in range(n_conv) for k in range(K)})
    off_index = {o: i for i, o in enumerate(off_ts)}
    n_off = len(off_ts)
    w_off = jnp.zeros((n_off, C_out, C_out), f32)
    for b in range(n_conv):
        for k in range(K):
            o = P_max - pads[b] + k * dil[b]
            blk = wt[b, :, :, k].T.astype(f32)       # (Cb_in, Cb_out)
            w_off = w_off.at[off_index[o],
                             b * Cb:(b + 1) * Cb,
                             b * Cb:(b + 1) * Cb].add(blk)
    w_off = w_off.astype(bf16)
    off_rows = tuple(o * V for o in off_ts)                       # row offsets
    pool_rows = tuple((P_max - 1 + k) * V for k in range(K_pool))

    # ---- stage 1: fused 1x1 convs + packed per-batch partial BN stats ----
    z_br, z_rs, stat1 = pl.pallas_call(
        _stage1_kernel,
        out_shape=(
            jax.ShapeDtypeStruct((N, rows, C_out), bf16),
            jax.ShapeDtypeStruct((N, rows, C_out), bf16),
            jax.ShapeDtypeStruct((N, 4, C_out), f32),
        ),
        grid_spec=pltpu.PrefetchScalarGridSpec(
            num_scalar_prefetch=0,
            grid=(N,),
            in_specs=[
                pl.BlockSpec((pl.Squeezed(), rows, C_in), lambda n: (n, 0, 0)),
                pl.BlockSpec((C_in, C_out), lambda n: (0, 0)),
                pl.BlockSpec((C_in, C_out), lambda n: (0, 0)),
            ],
            out_specs=[
                pl.BlockSpec((pl.Squeezed(), rows, C_out), lambda n: (n, 0, 0)),
                pl.BlockSpec((pl.Squeezed(), rows, C_out), lambda n: (n, 0, 0)),
                pl.BlockSpec((pl.Squeezed(), 4, C_out), lambda n: (n, 0, 0)),
            ],
        ),
        compiler_params=pltpu.CompilerParams(dimension_semantics=("parallel",)),
    )(x_flat, w_br, w_rs)

    # ---- glue: BN1 (branch input BNs) + residual BN scale/shift ----
    count = jnp.float32(N * rows)
    st1 = stat1.sum(axis=0)                                       # (4, C_out)
    sc1, sh1 = _bn_scale_shift(st1[0], st1[1], count,
                               gamma1.reshape(-1).astype(f32),
                               beta1.reshape(-1).astype(f32), eps)
    scr, shr = _bn_scale_shift(st1[2], st1[3], count,
                               gamma_r.astype(f32), beta_r.astype(f32), eps)
    scsh1 = jnp.stack([sc1, sh1], axis=0)                         # (2, C_out)

    # ---- stage 3: BN1+ReLU + fused dilated convs + maxpool branch ----
    stage3 = functools.partial(
        _stage3_kernel, rows=rows, pad_rows=pad_rows, c_out=C_out, cb=Cb,
        n_conv=n_conv, off_rows=off_rows, pool_rows=pool_rows)
    y2, stat2 = pl.pallas_call(
        stage3,
        out_shape=(
            jax.ShapeDtypeStruct((N, rows, C_out), bf16),
            jax.ShapeDtypeStruct((N, 2, C_out), f32),
        ),
        grid_spec=pltpu.PrefetchScalarGridSpec(
            num_scalar_prefetch=0,
            grid=(N,),
            in_specs=[
                pl.BlockSpec((pl.Squeezed(), rows, C_out), lambda n: (n, 0, 0)),
                pl.BlockSpec((2, C_out), lambda n: (0, 0)),
                pl.BlockSpec((n_off, C_out, C_out), lambda n: (0, 0, 0)),
            ],
            out_specs=[
                pl.BlockSpec((pl.Squeezed(), rows, C_out), lambda n: (n, 0, 0)),
                pl.BlockSpec((pl.Squeezed(), 2, C_out), lambda n: (n, 0, 0)),
            ],
            scratch_shapes=[pltpu.VMEM((rows + 2 * pad_rows, C_out), bf16)],
        ),
        compiler_params=pltpu.CompilerParams(dimension_semantics=("parallel",)),
    )(z_br, scsh1, w_off)

    # ---- glue: BN2 scale/shift; pack all stage-5 scale/shift into one array ----
    st2 = stat2.sum(axis=0)                                       # (2, C_out)
    sc2, sh2 = _bn_scale_shift(st2[0], st2[1], count,
                               gamma2.reshape(-1).astype(f32),
                               beta2.reshape(-1).astype(f32), eps)
    scsh2 = jnp.stack([sc2, sh2, scr, shr], axis=0)               # (4, C_out)

    # ---- stage 5: BN apply + residual add + fused NCHW transpose ----
    stage5 = functools.partial(_stage5_kernel, rows=rows, c_out=C_out)
    out_t = pl.pallas_call(
        stage5,
        out_shape=jax.ShapeDtypeStruct((N, C_out, rows), f32),
        grid_spec=pltpu.PrefetchScalarGridSpec(
            num_scalar_prefetch=0,
            grid=(N,),
            in_specs=[
                pl.BlockSpec((pl.Squeezed(), rows, C_out), lambda n: (n, 0, 0)),
                pl.BlockSpec((pl.Squeezed(), rows, C_out), lambda n: (n, 0, 0)),
                pl.BlockSpec((4, C_out), lambda n: (0, 0)),
            ],
            out_specs=pl.BlockSpec((pl.Squeezed(), C_out, rows),
                                   lambda n: (n, 0, 0)),
        ),
        compiler_params=pltpu.CompilerParams(dimension_semantics=("parallel",)),
    )(y2, z_rs, scsh2)

    # (N, C_out, T*V) -> (N, C_out, T, V): contiguous, metadata-only reshape.
    return out_t.reshape(N, C_out, T, V)


# ---------------------------------------------------------------------------
# Pure-JAX reference mirroring the kernel's bf16 intermediate rounding, so the
# check stays tight despite bf16 storage of z / y2.
# ---------------------------------------------------------------------------
def _reference(x, w1, gamma1, beta1, wt, gamma2, beta2, w_res, gamma_r, beta_r, *,
               kernel_size, dilations, eps):
    f32 = jnp.float32
    hp = jax.lax.Precision.HIGHEST
    q = lambda a: a.astype(jnp.bfloat16).astype(f32)

    N, C_in, T, V = x.shape
    NB, Cb, _ = w1.shape
    C_out = NB * Cb
    K = kernel_size
    rows = T * V

    xf = q(x).transpose(0, 2, 3, 1).reshape(N, rows, C_in)
    w_br = q(jnp.transpose(w1, (2, 0, 1)).reshape(C_in, C_out))
    w_rs = q(w_res.T)
    z_br = jnp.einsum('nrc,co->nro', xf, w_br, precision=hp)
    z_rs = jnp.einsum('nrc,co->nro', xf, w_rs, precision=hp)

    def scale_shift(z, g, b):
        mean = z.mean(axis=(0, 1))
        var = z.var(axis=(0, 1))
        sc = g / jnp.sqrt(var + eps)
        return sc, b - mean * sc

    sc1, sh1 = scale_shift(z_br, gamma1.reshape(-1).astype(f32),
                           beta1.reshape(-1).astype(f32))
    scr, shr = scale_shift(z_rs, gamma_r.astype(f32), beta_r.astype(f32))

    a = jnp.maximum(q(z_br) * sc1 + sh1, 0.0)          # BN applied to bf16 z
    a_q = q(a).reshape(N, T, V, C_out)                 # bf16 activation (scratch)

    outs = jnp.zeros((N, T, V, C_out), f32)
    for b_i, d in enumerate(dilations):
        pad = ((K - 1) * d) // 2
        ap = jnp.pad(a_q[..., b_i * Cb:(b_i + 1) * Cb],
                     ((0, 0), (pad, pad), (0, 0), (0, 0)))
        acc = jnp.zeros((N, T, V, Cb), f32)
        for k in range(K):
            wk = q(wt[b_i, :, :, k])                   # (Cb_out, Cb_in)
            acc = acc + jnp.einsum('ntvi,oi->ntvo', ap[:, k * d:k * d + T], wk,
                                   precision=hp)
        outs = outs.at[..., b_i * Cb:(b_i + 1) * Cb].set(acc)
    ap = jnp.pad(a_q[..., (NB - 1) * Cb:], ((0, 0), (1, 1), (0, 0), (0, 0)))
    pool = jnp.maximum(jnp.maximum(ap[:, 0:T], ap[:, 1:T + 1]), ap[:, 2:T + 2])
    outs = outs.at[..., (NB - 1) * Cb:].set(pool)

    y = outs.reshape(N, rows, C_out)
    sc2, sh2 = scale_shift(y, gamma2.reshape(-1).astype(f32),
                           beta2.reshape(-1).astype(f32))
    out = q(y) * sc2 + sh2 + q(z_rs) * scr + shr
    return out.reshape(N, T, V, C_out).transpose(0, 3, 1, 2)


if __name__ == "__main__":
    # Small shapes: N=2, in_channels=16, out_channels=80 (5 branches x 16), T=V=16
    N, C_in, C_out, T, V = 2, 16, 80, 16, 16
    kernel_size, stride, dilations = 3, 1, (1, 2, 3, 4)
    NB = len(dilations) + 1
    Cb = C_out // NB
    eps = 1e-5

    keys = jax.random.split(jax.random.PRNGKey(0), 10)
    x = jax.random.normal(keys[0], (N, C_in, T, V), dtype=jnp.float32)

    # Parameters.  weights_init zeroes conv biases, so they are omitted; BN
    # affine params are randomized to exercise the full path.
    w1 = 0.5 * jax.random.normal(keys[1], (NB, Cb, C_in), jnp.float32) / jnp.sqrt(C_in)
    wt = 0.5 * jax.random.normal(keys[2], (NB - 1, Cb, Cb, kernel_size),
                                 jnp.float32) / jnp.sqrt(Cb * kernel_size)
    w_res = 0.5 * jax.random.normal(keys[3], (C_out, C_in), jnp.float32) / jnp.sqrt(C_in)
    gamma1 = 1.0 + 0.1 * jax.random.normal(keys[4], (NB, Cb), dtype=jnp.float32)
    beta1 = 0.1 * jax.random.normal(keys[5], (NB, Cb), dtype=jnp.float32)
    gamma2 = 1.0 + 0.1 * jax.random.normal(keys[6], (NB, Cb), dtype=jnp.float32)
    beta2 = 0.1 * jax.random.normal(keys[7], (NB, Cb), dtype=jnp.float32)
    gamma_r = 1.0 + 0.1 * jax.random.normal(keys[8], (C_out,), dtype=jnp.float32)
    beta_r = 0.1 * jax.random.normal(keys[9], (C_out,), dtype=jnp.float32)

    out = multiscale_temporal_conv_forward(
        x, w1, gamma1, beta1, wt, gamma2, beta2, w_res, gamma_r, beta_r,
        kernel_size=kernel_size, stride=stride, dilations=dilations, eps=eps)
    out = jax.block_until_ready(out)

    ref = _reference(x, w1, gamma1, beta1, wt, gamma2, beta2, w_res, gamma_r, beta_r,
                     kernel_size=kernel_size, dilations=dilations, eps=eps)

    assert out.shape == (N, C_out, T, V), out.shape
    max_err = float(jnp.max(jnp.abs(out - ref)))
    mean_err = float(jnp.mean(jnp.abs(out - ref)))
    assert max_err < 3e-2, f"max abs error {max_err}"
    assert mean_err < 2e-3, f"mean abs error {mean_err}"
    print("KERNEL_OK")
</pallas_src>

<mosaic_0001>
module attributes {stable_mosaic.version = 11 : i64} {
  func.func @_stage1_kernel(%arg0: i32, %arg1: memref<1x256x16xbf16, #tpu.memory_space<vmem>>, %arg2: memref<16x80xbf16, #tpu.memory_space<vmem>>, %arg3: memref<16x80xbf16, #tpu.memory_space<vmem>>, %arg4: memref<1x256x80xbf16, #tpu.memory_space<vmem>>, %arg5: memref<1x256x80xbf16, #tpu.memory_space<vmem>>, %arg6: memref<1x4x80xf32, #tpu.memory_space<vmem>>) attributes {dimension_semantics = [#tpu.dimension_semantics<parallel>], iteration_bounds = array<i64: 2>, scalar_prefetch = 0 : i64, scratch_operands = 0 : i64, tpu.core_type = #tpu.core_type<tc>, window_params = [{transform_indices = @transform_0, window_bounds = array<i64: 1, 256, 16>}, {pipeline_mode = #tpu.pipeline_mode<synchronous>, transform_indices = @transform_1, window_bounds = array<i64: 16, 80>}, {pipeline_mode = #tpu.pipeline_mode<synchronous>, transform_indices = @transform_2, window_bounds = array<i64: 16, 80>}, {transform_indices = @transform_3, window_bounds = array<i64: 1, 256, 80>}, {transform_indices = @transform_4, window_bounds = array<i64: 1, 256, 80>}, {transform_indices = @transform_5, window_bounds = array<i64: 1, 4, 80>}]} {
    %c0 = arith.constant 0 : index
    %c0_0 = arith.constant 0 : index
    %c0_1 = arith.constant 0 : index
    %0 = vector.load %arg1[%c0, %c0_0, %c0_1] : memref<1x256x16xbf16, #tpu.memory_space<vmem>>, vector<1x256x16xbf16>
    %1 = vector.shape_cast %0 : vector<1x256x16xbf16> to vector<256x16xbf16>
    %c0_2 = arith.constant 0 : index
    %c0_3 = arith.constant 0 : index
    %2 = vector.load %arg2[%c0_2, %c0_3] : memref<16x80xbf16, #tpu.memory_space<vmem>>, vector<16x80xbf16>
    %cst = arith.constant dense<0.000000e+00> : vector<256x80xf32>
    %3 = tpu.matmul %1, %2, %cst {dimension_numbers = #tpu.dot_dimension_numbers<[1], [0], [0], [1], [0, 0, 1, 1], [], []>} : vector<256x16xbf16>, vector<16x80xbf16>, vector<256x80xf32> -> vector<256x80xf32>
    %c0_4 = arith.constant 0 : index
    %c0_5 = arith.constant 0 : index
    %4 = vector.load %arg3[%c0_4, %c0_5] : memref<16x80xbf16, #tpu.memory_space<vmem>>, vector<16x80xbf16>
    %cst_6 = arith.constant dense<0.000000e+00> : vector<256x80xf32>
    %5 = tpu.matmul %1, %4, %cst_6 {dimension_numbers = #tpu.dot_dimension_numbers<[1], [0], [0], [1], [0, 0, 1, 1], [], []>} : vector<256x16xbf16>, vector<16x80xbf16>, vector<256x80xf32> -> vector<256x80xf32>
    %6 = arith.truncf %3 : vector<256x80xf32> to vector<256x80xbf16>
    %c0_7 = arith.constant 0 : index
    %c0_8 = arith.constant 0 : index
    %c0_9 = arith.constant 0 : index
    %7 = vector.load %arg4[%c0_7, %c0_8, %c0_9] : memref<1x256x80xbf16, #tpu.memory_space<vmem>>, vector<1x256x80xbf16>
    %8 = vector.shape_cast %7 : vector<1x256x80xbf16> to vector<256x80xbf16>
    %9 = vector.shape_cast %6 : vector<256x80xbf16> to vector<1x256x80xbf16>
    tpu.vector_store %arg4[%c0_7, %c0_8, %c0_9], %9 {strides = array<i32>} : memref<1x256x80xbf16, #tpu.memory_space<vmem>>, vector<1x256x80xbf16>,
    %10 = arith.truncf %5 : vector<256x80xf32> to vector<256x80xbf16>
    %c0_10 = arith.constant 0 : index
    %c0_11 = arith.constant 0 : index
    %c0_12 = arith.constant 0 : index
    %11 = vector.load %arg5[%c0_10, %c0_11, %c0_12] : memref<1x256x80xbf16, #tpu.memory_space<vmem>>, vector<1x256x80xbf16>
    %12 = vector.shape_cast %11 : vector<1x256x80xbf16> to vector<256x80xbf16>
    %13 = vector.shape_cast %10 : vector<256x80xbf16> to vector<1x256x80xbf16>
    tpu.vector_store %arg5[%c0_10, %c0_11, %c0_12], %13 {strides = array<i32>} : memref<1x256x80xbf16, #tpu.memory_space<vmem>>, vector<1x256x80xbf16>,
    %cst_13 = arith.constant dense<0.000000e+00> : vector<80xf32>
    %14 = vector.multi_reduction <add>, %3, %cst_13 [0] : vector<256x80xf32> to vector<80xf32>
    %15 = vector.shape_cast %14 : vector<80xf32> to vector<1x80xf32>
    %16 = arith.mulf %3, %3 : vector<256x80xf32>
    %cst_14 = arith.constant dense<0.000000e+00> : vector<80xf32>
    %17 = vector.multi_reduction <add>, %16, %cst_14 [0] : vector<256x80xf32> to vector<80xf32>
    %18 = vector.shape_cast %17 : vector<80xf32> to vector<1x80xf32>
    %cst_15 = arith.constant dense<0.000000e+00> : vector<80xf32>
    %19 = vector.multi_reduction <add>, %5, %cst_15 [0] : vector<256x80xf32> to vector<80xf32>
    %20 = vector.shape_cast %19 : vector<80xf32> to vector<1x80xf32>
    %21 = arith.mulf %5, %5 : vector<256x80xf32>
    %cst_16 = arith.constant dense<0.000000e+00> : vector<80xf32>
    %22 = vector.multi_reduction <add>, %21, %cst_16 [0] : vector<256x80xf32> to vector<80xf32>
    %23 = vector.shape_cast %22 : vector<80xf32> to vector<1x80xf32>
    %24 = tpu.concatenate %15, %18, %20, %23 in 0 : vector<1x80xf32>, vector<1x80xf32>, vector<1x80xf32>, vector<1x80xf32> -> vector<4x80xf32>
    %c0_17 = arith.constant 0 : index
    %c0_18 = arith.constant 0 : index
    %c0_19 = arith.constant 0 : index
    %25 = vector.load %arg6[%c0_17, %c0_18, %c0_19] : memref<1x4x80xf32, #tpu.memory_space<vmem>>, vector<1x4x80xf32>
    %26 = vector.shape_cast %25 : vector<1x4x80xf32> to vector<4x80xf32>
    %27 = vector.shape_cast %24 : vector<4x80xf32> to vector<1x4x80xf32>
    tpu.vector_store %arg6[%c0_17, %c0_18, %c0_19], %27 {strides = array<i32>} : memref<1x4x80xf32, #tpu.memory_space<vmem>>, vector<1x4x80xf32>,
    return
  }
  func.func @transform_0(%arg0: i32) -> (i32, i32, i32) {
    %c0_i32 = arith.constant 0 : i32
    %c0_i32_0 = arith.constant 0 : i32
    %c0_i32_1 = arith.constant 0 : i32
    return %arg0, %c0_i32, %c0_i32_0 : i32, i32, i32
  }
  func.func @transform_1(%arg0: i32) -> (i32, i32) {
    %c0_i32 = arith.constant 0 : i32
    %c0_i32_0 = arith.constant 0 : i32
    %c0_i32_1 = arith.constant 0 : i32
    return %c0_i32, %c0_i32_0 : i32, i32
  }
  func.func @transform_2(%arg0: i32) -> (i32, i32) {
    %c0_i32 = arith.constant 0 : i32
    %c0_i32_0 = arith.constant 0 : i32
    %c0_i32_1 = arith.constant 0 : i32
    return %c0_i32, %c0_i32_0 : i32, i32
  }
  func.func @transform_3(%arg0: i32) -> (i32, i32, i32) {
    %c0_i32 = arith.constant 0 : i32
    %c0_i32_0 = arith.constant 0 : i32
    %c0_i32_1 = arith.constant 0 : i32
    return %arg0, %c0_i32, %c0_i32_0 : i32, i32, i32
  }
  func.func @transform_4(%arg0: i32) -> (i32, i32, i32) {
    %c0_i32 = arith.constant 0 : i32
    %c0_i32_0 = arith.constant 0 : i32
    %c0_i32_1 = arith.constant 0 : i32
    return %arg0, %c0_i32, %c0_i32_0 : i32, i32, i32
  }
  func.func @transform_5(%arg0: i32) -> (i32, i32, i32) {
    %c0_i32 = arith.constant 0 : i32
    %c0_i32_0 = arith.constant 0 : i32
    %c0_i32_1 = arith.constant 0 : i32
    return %arg0, %c0_i32, %c0_i32_0 : i32, i32, i32
  }
}

</mosaic_0001>

<bundles_post_ra>
// kernel: tpu_custom_call.1
= control target key start
LH: loop header
LB: loop body
LE: loop exit
PB: predicated region body
PF: predicated region fallthrough
CT: control target
= control target key end

     0   :  { %11 = vsyncpa [#allocation3], 0  ;;  %s2325_s0 = inlined_call_operand.vmem [shape: bf16[2,256,16], index: 0, kind: input, shape index: {}]   ;;  %s2326_s1 = inlined_call_operand.vmem [shape: bf16[16,80], index: 1, kind: input, shape index: {}]   ;;  %s2327_s2 = inlined_call_operand.vmem [shape: bf16[16,80], index: 2, kind: input, shape index: {}]   ;;  %s2328_s3 = inlined_call_operand.vmem [shape: bf16[2,256,80], index: 3, kind: output, shape index: {0}]   ;;  %s2329_s4 = inlined_call_operand.vmem [shape: bf16[2,256,80], index: 4, kind: output, shape index: {1}]   ;;  %s2330_s5 = inlined_call_operand.hbm [shape: f32[2,4,80], index: 5, kind: output, shape index: {2}]  }
   0x1   :  { %13 = vsyncpa [#allocation3 + $0x1], 0  ;;  %s1497_s18 = smov 0   ;;  %s1499_s19 = smov 0  }
   0x2   :  { %s1501_s20 = smov 0   ;;  %s1503_s21 = smov 0  }
   0x3 LB: > { %s1518_s22 = sadd.s32 4294967295, %s1465_s21   ;;  %s1222_s23 = sadd.s32 4294967294, %s1465_s21   ;;  %s1465_s21 = sphi %s1503_s21, %s2352_s21   ;;  %s1461_s20 = sphi %s1501_s20, %s2351_s20   ;;  %s1457_s19 = sphi %s1499_s19, %s2350_s19   ;;  %s1453_s18 = sphi %s1497_s18, %s2349_s18  }
   0x4   : > { %s1522_s24 = sadd.s32 1, %s1465_s21   ;;  %s146_s25 = sadd.s32 1, %s1461_s20 }
   0x5   : > { %s143_s26 = ssub.s32 %s1465_s21, %s1522_s24  ;;  %p156_p0 = scmp.ne.s32.totalorder %s1461_s20, %s1457_s19 }
   0x6   : > { %p144_p1 = scmp.eq.s32.totalorder %s143_s26, 0  ;;  %p157_p2 = scmp.eq.s32.totalorder %s1518_s22, 1 }
   0x7   : > { %p162_p3 = scmp.ne.s32.totalorder %s1457_s19, %s1453_s18  ;;  %p163_p4 = scmp.eq.s32.totalorder %s1222_s23, 1 }
   0x8   : > { %s1533_s27 = scalar_select %p144_p1, %s1461_s20, %s146_s25  }
   0x9   : > { %p1535_p5 = por %p157_p2, %p156_p0  ;;  %p1539_p6 = por %p163_p4, %p162_p3 }
   0xa   : > { %p1225_p7 = scmp.ge.s32.totalorder %s1465_s21, 1  ;;  %p195_p8 = scmp.lt.s32.totalorder %s1465_s21, 3 }
   0xc   : > { %p196_p9 = pnand %p1225_p7, %p195_p8 }
   0xe   : > { %199 = sbr.rel (%p196_p9) target bundleno = 327 (0x147), region = 32 }
  0x13   : > { %v1360_v0 = vld [vmem:[%s2326_s1] sm:$0xff]  ;;  %p233_p10 = scmp.lt.s32.totalorder %s1518_s22, 1  ;;  %vm369_vm0 = vcmask 130048   ;;  %vm636_vm1 = vcmask 650240   ;;  %vm733_vm2 = vcmask 654336   ;;  %s230_s26 = sand.u32 1, %s1457_s19  }
  0x14   : > { %v1361_v1 = vld [vmem:[%s2327_s2] sm:$0xff]  ;;  %425 = vmatpush.bf16.msra.mxu0 %v1360_v0  ;;  %1362 = vmatpush.bf16.msra.mxu2 %v1360_v0  ;;  %s1226_s30 = sshll.u32 %s230_s26, 2  ;;  %s1338_s6 = sshll.u32 %s1518_s22, 2  ;;  %vm1074_vm3 = vcmask 1040384   ;;  %vm1076_vm4 = vcmask 1041408   ;;  %vm1078_vm5 = vcmask 1042432  }
  0x15   : > { %522 = vmatpush.bf16.msra.mxu1 %v1361_v1  ;;  %s234_s9 = scalar_select %p233_p10, %s1518_s22, 1  ;;  %1363 = vmatpush.bf16.msra.mxu3 %v1361_v1 }
  0x16   : > { %s1092_s12 = scalar_lea.sflag [#allocation3], %s230_s26  ;;  %s1423_s17 = scalar_lea.hbm %s2330_s5, 8 }
  0x17   : > { %s1553_s10 = sshll.u32 %s234_s9, 7  ;;  %s1108_s9 = scalar_lea.hbm %s2330_s5, %s1338_s6 }
  0x18   : > { %s1559_s13 = scalar_lea.vmem %s2325_s0, %s1553_s10  ;;  %s1613_s16 = scalar_lea.vmem %s2328_s3, %s1553_s10 }
  0x19   : > { %v1344_v2 = vld [vmem:[%s1559_s13] sm:$0xff]  ;;  %v1345_v4 = vld [vmem:[%s1559_s13 + $0x8] sm:$0xff]  ;;  %v1346_v6 = vld [vmem:[%s1559_s13 + $0x10] sm:$0xff]  ;;  %s1619_s25 = scalar_lea.vmem %s2329_s4, %s1553_s10  ;;  %s232_s10 = scalar_lea.vmem [#allocation2], %s1226_s30 }
  0x1a   : > { %v1352_v3 = vld [vmem:[%s1559_s13 + $0x40] sm:$0xff]  ;;  %1301 = vmatmul.msk.bf16.vlgmr.msra.gmra.mxu0 %vm369_vm0, %v1344_v2  ;;  %1321 = vmatmul.msk.bf16.vlgmr.msra.gmra.mxu1 %vm369_vm0, %v1344_v2  ;;  %v1353_v5 = vld [vmem:[%s1559_s13 + $0x48] sm:$0xff]  ;;  %v1354_v7 = vld [vmem:[%s1559_s13 + $0x50] sm:$0xff]  ;;  %s1110_s11 = sshll.u32 %s232_s10, 4  ;;  %s1112_s22 = sshll.u32 %s1108_s9, 4  ;;  %s1111_s11 = int_to_ptr.vmem [resolvable:$true] %s1110_s11  ;;  %s1113_s22 = int_to_ptr.hbm [resolvable:$true] %s1112_s22 }
  0x1b   : > { %1309 = vmatmul.msk.bf16.vlgmr.msra.gmra.mxu2 %vm369_vm0, %v1352_v3  ;;  %1329 = vmatmul.msk.bf16.vlgmr.msra.gmra.mxu3 %vm369_vm0, %v1352_v3  ;;  %v1347_v8 = vld [vmem:[%s1559_s13 + $0x18] sm:$0xff]  ;;  %v1348_v10 = vld [vmem:[%s1559_s13 + $0x20] sm:$0xff]  ;;  %v1349_v12 = vld [vmem:[%s1559_s13 + $0x28] sm:$0xff] }
  0x1c   : > { %v1355_v9 = vld [vmem:[%s1559_s13 + $0x58] sm:$0xff]  ;;  %v1356_v11 = vld [vmem:[%s1559_s13 + $0x60] sm:$0xff]  ;;  %v1357_v13 = vld [vmem:[%s1559_s13 + $0x68] sm:$0xff] }
  0x1d   : > { %v1350_v14 = vld [vmem:[%s1559_s13 + $0x30] sm:$0xff]  ;;  %v1351_v16 = vld [vmem:[%s1559_s13 + $0x38] sm:$0xff] }
  0x1e   : > { %v1358_v15 = vld [vmem:[%s1559_s13 + $0x70] sm:$0xff]  ;;  %v1359_v17 = vld [vmem:[%s1559_s13 + $0x78] sm:$0xff]  ;;  %s1417_s13 = sshra.s32 %s1113_s22, 4  ;;  %s1418_s13 = int_to_ptr.hbm [resolvable:$true] %s1417_s13 }
  0x1f   : > { %s1419_s14 = scalar_lea.hbm %s1418_s13, 4  ;;  %p1424_p0 = scmp.lt.s32.totalorder %s1418_s13, %s2330_s5 }
  0x20   : > { %p1420_p11 = scmp.ne.s32.totalorder %s1418_s13, %s1419_s14  ;;  %p1425_p1 = scmp.lt.s32.totalorder %s1423_s17, %s1419_s14 }
  0x22   : > { %p1421_p12 = pnand %p1420_p11, %p1535_p5  ;;  %p1426_p2 = por %p1425_p1, %p1424_p0 }
  0x24   : > { %p1422_p13 = pneg %p1421_p12 }
  0x26   : > { %p1427_p3 = pnand %p1426_p2, %p1422_p13 }
  0x2a   : > { %1302 = vmatmul.msk.bf16.gmra.mxu0 %vm369_vm0, %v1345_v4  ;;  %1322 = vmatmul.msk.bf16.gmra.mxu1 %vm369_vm0, %v1345_v4 }
  0x2b   : > { %1310 = vmatmul.msk.bf16.gmra.mxu2 %vm369_vm0, %v1353_v5  ;;  %1330 = vmatmul.msk.bf16.gmra.mxu3 %vm369_vm0, %v1353_v5 }
  0x3a   : > { %1303 = vmatmul.msk.bf16.gmra.mxu0 %vm369_vm0, %v1346_v6  ;;  %1323 = vmatmul.msk.bf16.gmra.mxu1 %vm369_vm0, %v1346_v6 }
  0x3b   : > { %1311 = vmatmul.msk.bf16.gmra.mxu2 %vm369_vm0, %v1354_v7  ;;  %1331 = vmatmul.msk.bf16.gmra.mxu3 %vm369_vm0, %v1354_v7 }
  0x4a   : > { %1304 = vmatmul.msk.bf16.gmra.mxu0 %vm369_vm0, %v1347_v8  ;;  %1324 = vmatmul.msk.bf16.gmra.mxu1 %vm369_vm0, %v1347_v8 }
  0x4b   : > { %1312 = vmatmul.msk.bf16.gmra.mxu2 %vm369_vm0, %v1355_v9  ;;  %1332 = vmatmul.msk.bf16.gmra.mxu3 %vm369_vm0, %v1355_v9 }
  0x5a   : > { %1305 = vmatmul.msk.bf16.gmra.mxu0 %vm369_vm0, %v1348_v10  ;;  %1325 = vmatmul.msk.bf16.gmra.mxu1 %vm369_vm0, %v1348_v10 }
  0x5b   : > { %1313 = vmatmul.msk.bf16.gmra.mxu2 %vm369_vm0, %v1356_v11  ;;  %1333 = vmatmul.msk.bf16.gmra.mxu3 %vm369_vm0, %v1356_v11 }
  0x6a   : > { %1306 = vmatmul.msk.bf16.gmra.mxu0 %vm369_vm0, %v1349_v12  ;;  %1326 = vmatmul.msk.bf16.gmra.mxu1 %vm369_vm0, %v1349_v12 }
  0x6b   : > { %1314 = vmatmul.msk.bf16.gmra.mxu2 %vm369_vm0, %v1357_v13  ;;  %1334 = vmatmul.msk.bf16.gmra.mxu3 %vm369_vm0, %v1357_v13 }
  0x7a   : > { %1307 = vmatmul.msk.bf16.gmra.mxu0 %vm369_vm0, %v1350_v14  ;;  %1327 = vmatmul.msk.bf16.gmra.mxu1 %vm369_vm0, %v1350_v14 }
  0x7b   : > { %1315 = vmatmul.msk.bf16.gmra.mxu2 %vm369_vm0, %v1358_v15  ;;  %1335 = vmatmul.msk.bf16.gmra.mxu3 %vm369_vm0, %v1358_v15 }
  0x8a   : > { %1308 = vmatmul.msk.bf16.gmra.mxu0 %vm369_vm0, %v1351_v16  ;;  %1328 = vmatmul.msk.bf16.gmra.mxu1 %vm369_vm0, %v1351_v16 }
  0x8b   : > { %1316 = vmatmul.msk.bf16.gmra.mxu2 %vm369_vm0, %v1359_v17  ;;  %1336 = vmatmul.msk.bf16.gmra.mxu3 %vm369_vm0, %v1359_v17 }
  0x97   : > { %v427_v18 = vpop.f32.mrf.mxu0  ;;  %v524_v19 = vpop.f32.mrf.mxu1 }
  0x98   : > { %v604_v20 = vpack.c.bf16 %v427_v18, %v427_v18  ;;  %v669_v21 = vpack.c.bf16 %v524_v19, %v524_v19  ;;  %v803_v22 = vmul.f32 %v427_v18, %v427_v18  ;;  %v734_v25 = vsel %vm733_vm2, %v427_v18, 0.0 }
  0x99   : > { %v973_v26 = vmul.f32 %v524_v19, %v524_v19  ;;  %v904_v35 = vsel %vm733_vm2, %v524_v19, 0.0 }
  0x9a   : > { %637 = vst.msk [vmem:[%s1613_s16] sm:$0xf] %vm636_vm1, %v604_v20  ;;  %v835_v39 = vsel %vm733_vm2, %v803_v22, 0.0 }
  0x9b   : > { %701 = vst.msk [vmem:[%s1619_s25] sm:$0xf] %vm636_vm1, %v669_v21  ;;  %v1005_v42 = vsel %vm733_vm2, %v973_v26, 0.0 }
  0x9e   : > { %v1625_v23 = vpop.f32.mrf.mxu2  ;;  %v1627_v24 = vpop.f32.mrf.mxu3 }
  0x9f   : > { %v429_v27 = vpop.f32.mrf.mxu0  ;;  %v526_v28 = vpop.f32.mrf.mxu1  ;;  %v620_v29 = vpack.c.bf16 %v1625_v23, %v1625_v23  ;;  %v685_v30 = vpack.c.bf16 %v1627_v24, %v1627_v24 }
  0xa0   : > { %v605_v31 = vpack.c.bf16 %v429_v27, %v429_v27  ;;  %v735_v32 = vsel %vm733_vm2, %v429_v27, 0.0  ;;  %v804_v33 = vmul.f32 %v429_v27, %v429_v27  ;;  %v670_v34 = vpack.c.bf16 %v526_v28, %v526_v28 }
  0xa1   : > { %v736_v36 = vadd.f32 %v735_v32, %v734_v25  ;;  %v905_v37 = vsel %vm733_vm2, %v526_v28, 0.0  ;;  %v974_v38 = vmul.f32 %v526_v28, %v526_v28  ;;  %653 = vst.msk [vmem:[%s1613_s16 + $0x40] sm:$0xf] %vm636_vm1, %v620_v29 }
  0xa2   : > { %638 = vst.msk [vmem:[%s1613_s16 + $0x4] sm:$0xf] %vm636_vm1, %v605_v31  ;;  %v836_v40 = vsel %vm733_vm2, %v804_v33, 0.0  ;;  %v906_v41 = vadd.f32 %v905_v37, %v904_v35 }
  0xa3   : > { %v837_v43 = vadd.f32 %v836_v40, %v835_v39  ;;  %702 = vst.msk [vmem:[%s1619_s25 + $0x4] sm:$0xf] %vm636_vm1, %v670_v34  ;;  %v1006_v44 = vsel %vm733_vm2, %v974_v38, 0.0 }
  0xa4   : > { %v1007_v45 = vadd.f32 %v1006_v44, %v1005_v42  ;;  %717 = vst.msk [vmem:[%s1619_s25 + $0x40] sm:$0xf] %vm636_vm1, %v685_v30 }
  0xa6   : > { %v1649_v46 = vpop.f32.mrf.mxu2  ;;  %v1651_v47 = vpop.f32.mrf.mxu3 }
  0xa7   : > { %v432_v48 = vpop.f32.mrf.mxu0  ;;  %v529_v49 = vpop.f32.mrf.mxu1  ;;  %v621_v50 = vpack.c.bf16 %v1649_v46, %v1649_v46  ;;  %v686_v51 = vpack.c.bf16 %v1651_v47, %v1651_v47 }
  0xa8   : > { %v606_v52 = vpack.c.bf16 %v432_v48, %v432_v48  ;;  %v737_v53 = vsel %vm733_vm2, %v432_v48, 0.0  ;;  %v805_v54 = vmul.f32 %v432_v48, %v432_v48  ;;  %v671_v55 = vpack.c.bf16 %v529_v49, %v529_v49 }
  0xa9   : > { %v738_v56 = vadd.f32 %v737_v53, %v736_v36  ;;  %v907_v57 = vsel %vm733_vm2, %v529_v49, 0.0  ;;  %v975_v58 = vmul.f32 %v529_v49, %v529_v49  ;;  %654 = vst.msk [vmem:[%s1613_s16 + $0x44] sm:$0xf] %vm636_vm1, %v621_v50 }
  0xaa   : > { %639 = vst.msk [vmem:[%s1613_s16 + $0x8] sm:$0xf] %vm636_vm1, %v606_v52  ;;  %v838_v59 = vsel %vm733_vm2, %v805_v54, 0.0  ;;  %v908_v60 = vadd.f32 %v907_v57, %v906_v41 }
  0xab   : > { %v839_v61 = vadd.f32 %v838_v59, %v837_v43  ;;  %703 = vst.msk [vmem:[%s1619_s25 + $0x8] sm:$0xf] %vm636_vm1, %v671_v55  ;;  %v1008_v62 = vsel %vm733_vm2, %v975_v58, 0.0 }
  0xac   : > { %v1009_v63 = vadd.f32 %v1008_v62, %v1007_v45  ;;  %718 = vst.msk [vmem:[%s1619_s25 + $0x44] sm:$0xf] %vm636_vm1, %v686_v51 }
  0xae   : > { %v1669_v0 = vpop.f32.mrf.mxu2  ;;  %v1671_v1 = vpop.f32.mrf.mxu3 }
  0xaf   : > { %v434_v2 = vpop.f32.mrf.mxu0  ;;  %v531_v3 = vpop.f32.mrf.mxu1  ;;  %v622_v4 = vpack.c.bf16 %v1669_v0, %v1669_v0  ;;  %v687_v5 = vpack.c.bf16 %v1671_v1, %v1671_v1 }
  0xb0   : > { %v607_v6 = vpack.c.bf16 %v434_v2, %v434_v2  ;;  %v739_v7 = vsel %vm733_vm2, %v434_v2, 0.0  ;;  %v806_v8 = vmul.f32 %v434_v2, %v434_v2  ;;  %v672_v9 = vpack.c.bf16 %v531_v3, %v531_v3 }
  0xb1   : > { %v740_v10 = vadd.f32 %v739_v7, %v738_v56  ;;  %v909_v11 = vsel %vm733_vm2, %v531_v3, 0.0  ;;  %v976_v12 = vmul.f32 %v531_v3, %v531_v3  ;;  %655 = vst.msk [vmem:[%s1613_s16 + $0x48] sm:$0xf] %vm636_vm1, %v622_v4 }
  0xb2   : > { %640 = vst.msk [vmem:[%s1613_s16 + $0xc] sm:$0xf] %vm636_vm1, %v607_v6  ;;  %v840_v13 = vsel %vm733_vm2, %v806_v8, 0.0  ;;  %v910_v14 = vadd.f32 %v909_v11, %v908_v60 }
  0xb3   : > { %v841_v15 = vadd.f32 %v840_v13, %v839_v61  ;;  %704 = vst.msk [vmem:[%s1619_s25 + $0xc] sm:$0xf] %vm636_vm1, %v672_v9  ;;  %v1010_v16 = vsel %vm733_vm2, %v976_v12, 0.0 }
  0xb4   : > { %v1011_v17 = vadd.f32 %v1010_v16, %v1009_v63  ;;  %719 = vst.msk [vmem:[%s1619_s25 + $0x48] sm:$0xf] %vm636_vm1, %v687_v5 }
  0xb6   : > { %v1689_v18 = vpop.f32.mrf.mxu2  ;;  %v1691_v19 = vpop.f32.mrf.mxu3 }
  0xb7   : > { %v437_v20 = vpop.f32.mrf.mxu0  ;;  %v534_v21 = vpop.f32.mrf.mxu1  ;;  %v623_v22 = vpack.c.bf16 %v1689_v18, %v1689_v18  ;;  %v688_v25 = vpack.c.bf16 %v1691_v19, %v1691_v19 }
  0xb8   : > { %v608_v26 = vpack.c.bf16 %v437_v20, %v437_v20  ;;  %v741_v27 = vsel %vm733_vm2, %v437_v20, 0.0  ;;  %v807_v28 = vmul.f32 %v437_v20, %v437_v20  ;;  %v673_v29 = vpack.c.bf16 %v534_v21, %v534_v21 }
  0xb9   : > { %v1698_v30 = vadd.f32 %v741_v27, %v740_v10  ;;  %v911_v31 = vsel %vm733_vm2, %v534_v21, 0.0  ;;  %v977_v32 = vmul.f32 %v534_v21, %v534_v21  ;;  %656 = vst.msk [vmem:[%s1613_s16 + $0x4c] sm:$0xf] %vm636_vm1, %v623_v22  ;;  %v819_v22 = vmul.f32 %v1625_v23, %v1625_v23 }
  0xba   : > { %641 = vst.msk [vmem:[%s1613_s16 + $0x10] sm:$0xf] %vm636_vm1, %v608_v26  ;;  %v842_v33 = vsel %vm733_vm2, %v807_v28, 0.0  ;;  %v1706_v34 = vadd.f32 %v911_v31, %v910_v14  ;;  %v989_v28 = vmul.f32 %v1627_v24, %v1627_v24 }
  0xbb   : > { %v1708_v35 = vadd.f32 %v842_v33, %v841_v15  ;;  %705 = vst.msk [vmem:[%s1619_s25 + $0x10] sm:$0xf] %vm636_vm1, %v673_v29  ;;  %v1012_v36 = vsel %vm733_vm2, %v977_v32, 0.0  ;;  %v820_v33 = vmul.f32 %v1649_v46, %v1649_v46 }
  0xbc   : > { %v1713_v37 = vadd.f32 %v1012_v36, %v1011_v17  ;;  %720 = vst.msk [vmem:[%s1619_s25 + $0x4c] sm:$0xf] %vm636_vm1, %v688_v25  ;;  %v990_v36 = vmul.f32 %v1651_v47, %v1651_v47 }
  0xbe   : > { %v1717_v38 = vpop.f32.mrf.mxu2  ;;  %v1719_v39 = vpop.f32.mrf.mxu3 }
  0xbf   : > { %v1721_v40 = vpop.f32.mrf.mxu0  ;;  %v1723_v41 = vpop.f32.mrf.mxu1  ;;  %v624_v42 = vpack.c.bf16 %v1717_v38, %v1717_v38  ;;  %v689_v45 = vpack.c.bf16 %v1719_v39, %v1719_v39 }
  0xc0   : > { %v609_v43 = vpack.c.bf16 %v1721_v40, %v1721_v40  ;;  %v674_v44 = vpack.c.bf16 %v1723_v41, %v1723_v41 }
  0xc1   : > { %657 = vst.msk [vmem:[%s1613_s16 + $0x50] sm:$0xf] %vm636_vm1, %v624_v42  ;;  %v1867_v42 = vsel %vm733_vm2, %v1625_v23, 0.0  ;;  %v1889_v23 = vsel %vm733_vm2, %v1649_v46, 0.0  ;;  %v978_v46 = vmul.f32 %v1723_v41, %v1723_v41 }
  0xc2   : > { %642 = vst.msk [vmem:[%s1613_s16 + $0x14] sm:$0xf] %vm636_vm1, %v609_v43  ;;  %v821_v43 = vmul.f32 %v1669_v0, %v1669_v0 }
  0xc3   : > { %706 = vst.msk [vmem:[%s1619_s25 + $0x14] sm:$0xf] %vm636_vm1, %v674_v44  ;;  %v1874_v44 = vsel %vm733_vm2, %v819_v22, 0.0  ;;  %v743_v22 = vsel %vm733_vm2, %v1721_v40, 0.0 }
  0xc4   : > { %721 = vst.msk [vmem:[%s1619_s25 + $0x50] sm:$0xf] %vm636_vm1, %v689_v45  ;;  %v1878_v45 = vsel %vm733_vm2, %v1627_v24, 0.0  ;;  %v808_v24 = vmul.f32 %v1721_v40, %v1721_v40 }
  0xc6   : > { %v1741_v48 = vpop.f32.mrf.mxu2  ;;  %v1743_v49 = vpop.f32.mrf.mxu3 }
  0xc7   : > { %v1745_v50 = vpop.f32.mrf.mxu0  ;;  %v1747_v51 = vpop.f32.mrf.mxu1  ;;  %v625_v52 = vpack.c.bf16 %v1741_v48, %v1741_v48  ;;  %v690_v55 = vpack.c.bf16 %v1743_v49, %v1743_v49 }
  0xc8   : > { %v610_v53 = vpack.c.bf16 %v1745_v50, %v1745_v50  ;;  %v675_v54 = vpack.c.bf16 %v1747_v51, %v1747_v51  ;;  %v979_v40 = vmul.f32 %v1747_v51, %v1747_v51 }
  0xc9   : > { %658 = vst.msk [vmem:[%s1613_s16 + $0x54] sm:$0xf] %vm636_vm1, %v625_v52  ;;  %v1881_v52 = vsel %vm733_vm2, %v989_v28, 0.0  ;;  %v913_v28 = vsel %vm733_vm2, %v1723_v41, 0.0  ;;  %v1964_v41 = vsel %vm733_vm2, %v1691_v19, 0.0 }
  0xca   : > { %643 = vst.msk [vmem:[%s1613_s16 + $0x18] sm:$0xf] %vm636_vm1, %v610_v53  ;;  %v991_v53 = vmul.f32 %v1671_v1, %v1671_v1 }
  0xcb   : > { %707 = vst.msk [vmem:[%s1619_s25 + $0x18] sm:$0xf] %vm636_vm1, %v675_v54  ;;  %v1892_v54 = vsel %vm733_vm2, %v820_v33, 0.0 }
  0xcc   : > { %722 = vst.msk [vmem:[%s1619_s25 + $0x54] sm:$0xf] %vm636_vm1, %v690_v55  ;;  %v1896_v55 = vsel %vm733_vm2, %v1651_v47, 0.0 }
  0xce   : > { %v1765_v56 = vpop.f32.mrf.mxu2  ;;  %v1767_v57 = vpop.f32.mrf.mxu3 }
  0xcf   : > { %v1769_v58 = vpop.f32.mrf.mxu0  ;;  %v1771_v59 = vpop.f32.mrf.mxu1  ;;  %v626_v60 = vpack.c.bf16 %v1765_v56, %v1765_v56  ;;  %v691_v63 = vpack.c.bf16 %v1767_v57, %v1767_v57 }
  0xd0   : > { %v611_v61 = vpack.c.bf16 %v1769_v58, %v1769_v58  ;;  %v676_v62 = vpack.c.bf16 %v1771_v59, %v1771_v59 }
  0xd1   : > { %659 = vst.msk [vmem:[%s1613_s16 + $0x58] sm:$0xf] %vm636_vm1, %v626_v60  ;;  %v1901_v60 = vsel %vm733_vm2, %v990_v36, 0.0 }
  0xd2   : > { %644 = vst.msk [vmem:[%s1613_s16 + $0x1c] sm:$0xf] %vm636_vm1, %v611_v61  ;;  %v1905_v61 = vsel %vm733_vm2, %v1669_v0, 0.0  ;;  %v992_v0 = vmul.f32 %v1691_v19, %v1691_v19 }
  0xd3   : > { %708 = vst.msk [vmem:[%s1619_s25 + $0x1c] sm:$0xf] %vm636_vm1, %v676_v62  ;;  %v822_v62 = vmul.f32 %v1689_v18, %v1689_v18 }
  0xd4   : > { %723 = vst.msk [vmem:[%s1619_s25 + $0x58] sm:$0xf] %vm636_vm1, %v691_v63  ;;  %v1967_v36 = vsel %vm733_vm2, %v992_v0, 0.0  ;;  %v810_v0 = vmul.f32 %v1769_v58, %v1769_v58 }
  0xd5   : > { %v1954_v33 = vsel %vm733_vm2, %v822_v62, 0.0  ;;  %v915_v62 = vsel %vm733_vm2, %v1747_v51, 0.0  ;;  %v917_v51 = vsel %vm733_vm2, %v1771_v59, 0.0 }
  0xd6   : > { %v1789_v2 = vpop.f32.mrf.mxu2  ;;  %v1791_v3 = vpop.f32.mrf.mxu3 }
  0xd7   : > { %v1793_v4 = vpop.f32.mrf.mxu0  ;;  %v1795_v5 = vpop.f32.mrf.mxu1  ;;  %v627_v6 = vpack.c.bf16 %v1789_v2, %v1789_v2  ;;  %v692_v9 = vpack.c.bf16 %v1791_v3, %v1791_v3 }
  0xd8   : > { %v612_v7 = vpack.c.bf16 %v1793_v4, %v1793_v4  ;;  %v677_v8 = vpack.c.bf16 %v1795_v5, %v1795_v5 }
  0xd9   : > { %660 = vst.msk [vmem:[%s1613_s16 + $0x5c] sm:$0xf] %vm636_vm1, %v627_v6  ;;  %v1916_v6 = vsel %vm733_vm2, %v821_v43, 0.0  ;;  %v1971_v43 = vsel %vm733_vm2, %v1717_v38, 0.0 }
  0xda   : > { %645 = vst.msk [vmem:[%s1613_s16 + $0x20] sm:$0xf] %vm636_vm1, %v612_v7  ;;  %v1920_v7 = vsel %vm733_vm2, %v1671_v1, 0.0 }
  0xdb   : > { %709 = vst.msk [vmem:[%s1619_s25 + $0x20] sm:$0xf] %vm636_vm1, %v677_v8 }
  0xdc   : > { %724 = vst.msk [vmem:[%s1619_s25 + $0x5c] sm:$0xf] %vm636_vm1, %v692_v9 }
  0xde   : > { %v1813_v10 = vpop.f32.mrf.mxu2  ;;  %v1815_v11 = vpop.f32.mrf.mxu3 }
  0xdf   : > { %v1817_v12 = vpop.f32.mrf.mxu0  ;;  %v1819_v13 = vpop.f32.mrf.mxu1  ;;  %v628_v14 = vpack.c.bf16 %v1813_v10, %v1813_v10  ;;  %v693_v17 = vpack.c.bf16 %v1815_v11, %v1815_v11 }
  0xe0   : > { %v613_v15 = vpack.c.bf16 %v1817_v12, %v1817_v12  ;;  %v678_v16 = vpack.c.bf16 %v1819_v13, %v1819_v13 }
  0xe1   : > { %661 = vst.msk [vmem:[%s1613_s16 + $0x60] sm:$0xf] %vm636_vm1, %v628_v14 }
  0xe2   : > { %646 = vst.msk [vmem:[%s1613_s16 + $0x24] sm:$0xf] %vm636_vm1, %v613_v15  ;;  %v1931_v15 = vsel %vm733_vm2, %v991_v53, 0.0  ;;  %v744_v53 = vadd.f32 %v743_v22, %v1698_v30  ;;  %v980_v30 = vmul.f32 %v1771_v59, %v1771_v59 }
  0xe3   : > { %710 = vst.msk [vmem:[%s1619_s25 + $0x24] sm:$0xf] %vm636_vm1, %v678_v16 }
  0xe4   : > { %725 = vst.msk [vmem:[%s1619_s25 + $0x60] sm:$0xf] %vm636_vm1, %v693_v17 }
  0xe6   : > { %v1837_v20 = vpop.f32.mrf.mxu2  ;;  %v1839_v21 = vpop.f32.mrf.mxu3 }
  0xe7   : > { %v1843_v25 = vpop.f32.mrf.mxu0  ;;  %v1845_v26 = vpop.f32.mrf.mxu1  ;;  %v629_v27 = vpack.c.bf16 %v1837_v20, %v1837_v20  ;;  %v694_v32 = vpack.c.bf16 %v1839_v21, %v1839_v21 }
  0xe8   : > { %v614_v29 = vpack.c.bf16 %v1843_v25, %v1843_v25  ;;  %v679_v31 = vpack.c.bf16 %v1845_v26, %v1845_v26 }
  0xe9   : > { %662 = vst.msk [vmem:[%s1613_s16 + $0x64] sm:$0xf] %vm636_vm1, %v629_v27  ;;  %v844_v27 = vsel %vm733_vm2, %v808_v24, 0.0 }
  0xea   : > { %647 = vst.msk [vmem:[%s1613_s16 + $0x28] sm:$0xf] %vm636_vm1, %v614_v29  ;;  %v1946_v29 = vsel %vm733_vm2, %v1689_v18, 0.0  ;;  %v745_v18 = vsel %vm733_vm2, %v1745_v50, 0.0  ;;  %v845_v24 = vadd.f32 %v844_v27, %v1708_v35 }
  0xeb   : > { %711 = vst.msk [vmem:[%s1619_s25 + $0x28] sm:$0xf] %vm636_vm1, %v679_v31  ;;  %v1014_v31 = vsel %vm733_vm2, %v978_v46, 0.0  ;;  %v914_v46 = vadd.f32 %v913_v28, %v1706_v34  ;;  %v1016_v34 = vsel %vm733_vm2, %v979_v40, 0.0 }
  0xec   : > { %726 = vst.msk [vmem:[%s1619_s25 + $0x64] sm:$0xf] %vm636_vm1, %v694_v32  ;;  %v809_v32 = vmul.f32 %v1745_v50, %v1745_v50  ;;  %v823_v50 = vmul.f32 %v1717_v38, %v1717_v38  ;;  %v1015_v19 = vadd.f32 %v1014_v31, %v1713_v37  ;;  %v747_v38 = vsel %vm733_vm2, %v1769_v58, 0.0 }
  0xed   : > { %v916_v28 = vadd.f32 %v915_v62, %v914_v46 }
  0xee   : > { %v1911_v63 = vpop.f32.mrf.mxu2  ;;  %v1913_v47 = vpop.f32.mrf.mxu3  ;;  %v846_v35 = vsel %vm733_vm2, %v809_v32, 0.0  ;;  %v1017_v46 = vadd.f32 %v1016_v34, %v1015_v19  ;;  %v993_v34 = vmul.f32 %v1719_v39, %v1719_v39 }
  0xef   : > { %2341 = vst [vmem:[#allocation5_spill] sm:$0xff] %v1911_v63  ;;  %v1924_v8 = vpop.f32.mrf.mxu0  ;;  %v1926_v9 = vpop.f32.mrf.mxu1  ;;  %v630_v14 = vpack.c.bf16 %v1911_v63, %v1911_v63  ;;  %v695_v17 = vpack.c.bf16 %v1913_v47, %v1913_v47  ;;  %v847_v40 = vadd.f32 %v846_v35, %v845_v24  ;;  %v749_v63 = vsel %vm733_vm2, %v1793_v4, 0.0 }
  0xf0   : > { %2342 = vst [vmem:[#allocation6_spill] sm:$0xff] %v1913_v47  ;;  %v615_v16 = vpack.c.bf16 %v1924_v8, %v1924_v8  ;;  %v680_v1 = vpack.c.bf16 %v1926_v9, %v1926_v9  ;;  %v1018_v47 = vsel %vm733_vm2, %v980_v30, 0.0  ;;  %v812_v30 = vmul.f32 %v1817_v12, %v1817_v12 }
  0xf1   : > { %663 = vst.msk [vmem:[%s1613_s16 + $0x68] sm:$0xf] %vm636_vm1, %v630_v14  ;;  %v746_v14 = vadd.f32 %v745_v18, %v744_v53  ;;  %v848_v18 = vsel %vm733_vm2, %v810_v0, 0.0  ;;  %v2017_v53 = vsel %vm733_vm2, %v823_v50, 0.0  ;;  %v919_v0 = vsel %vm733_vm2, %v1795_v5, 0.0 }
  0xf2   : > { %648 = vst.msk [vmem:[%s1613_s16 + $0x2c] sm:$0xf] %vm636_vm1, %v615_v16  ;;  %v849_v19 = vadd.f32 %v848_v18, %v847_v40  ;;  %v751_v35 = vsel %vm733_vm2, %v1817_v12, 0.0  ;;  %v983_v12 = vmul.f32 %v1845_v26, %v1845_v26 }
  0xf3   : > { %712 = vst.msk [vmem:[%s1619_s25 + $0x2c] sm:$0xf] %vm636_vm1, %v680_v1  ;;  %v811_v1 = vmul.f32 %v1793_v4, %v1793_v4  ;;  %v748_v62 = vadd.f32 %v747_v38, %v746_v14  ;;  %v1019_v14 = vadd.f32 %v1018_v47, %v1017_v46  ;;  %v982_v4 = vmul.f32 %v1819_v13, %v1819_v13 }
  0xf4   : > { %727 = vst.msk [vmem:[%s1619_s25 + $0x68] sm:$0xf] %vm636_vm1, %v695_v17  ;;  %v981_v17 = vmul.f32 %v1795_v5, %v1795_v5  ;;  %v2042_v5 = vsel %vm733_vm2, %v1719_v39, 0.0  ;;  %v921_v39 = vsel %vm733_vm2, %v1819_v13, 0.0  ;;  %v923_v13 = vsel %vm733_vm2, %v1845_v26, 0.0 }
  0xf5   : > { %v850_v24 = vsel %vm733_vm2, %v811_v1, 0.0  ;;  %v750_v38 = vadd.f32 %v749_v63, %v748_v62  ;;  %v1022_v40 = vsel %vm733_vm2, %v982_v4, 0.0  ;;  %v755_v26 = vsel %vm733_vm2, %v1924_v8, 0.0 }
  0xf6   : > { %v1993_v16 = vpop.f32.mrf.mxu2  ;;  %v1995_v37 = vpop.f32.mrf.mxu3  ;;  %v1020_v50 = vsel %vm733_vm2, %v981_v17, 0.0  ;;  %v851_v47 = vadd.f32 %v850_v24, %v849_v19  ;;  %v753_v24 = vsel %vm733_vm2, %v1843_v25, 0.0 }
  0xf7   : > { %2343 = vst [vmem:[#allocation7_spill] sm:$0xff] %v1993_v16  ;;  %v2003_v22 = vpop.f32.mrf.mxu0  ;;  %v2005_v27 = vpop.f32.mrf.mxu1  ;;  %v631_v58 = vpack.c.bf16 %v1993_v16, %v1993_v16  ;;  %v696_v32 = vpack.c.bf16 %v1995_v37, %v1995_v37  ;;  %v918_v16 = vadd.f32 %v917_v51, %v916_v28  ;;  %v813_v51 = vmul.f32 %v1843_v25, %v1843_v25 }
  0xf8   : > { %v616_v31 = vpack.c.bf16 %v2003_v22, %v2003_v22  ;;  %v681_v59 = vpack.c.bf16 %v2005_v27, %v2005_v27  ;;  %v1021_v17 = vadd.f32 %v1020_v50, %v1019_v14  ;;  %v814_v50 = vmul.f32 %v1924_v8, %v1924_v8 }
  0xf9   : > { %664 = vst.msk [vmem:[%s1613_s16 + $0x6c] sm:$0xf] %vm636_vm1, %v631_v58  ;;  %v920_v1 = vadd.f32 %v919_v0, %v918_v16  ;;  %v854_v0 = vsel %vm733_vm2, %v813_v51, 0.0  ;;  %v1024_v14 = vsel %vm733_vm2, %v983_v12, 0.0  ;;  %v2077_v25 = vsel %vm733_vm2, %v993_v34, 0.0 }
  0xfa   : > { %649 = vst.msk [vmem:[%s1613_s16 + $0x30] sm:$0xf] %vm636_vm1, %v616_v31  ;;  %v752_v31 = vadd.f32 %v751_v35, %v750_v38  ;;  %v984_v35 = vmul.f32 %v1926_v9, %v1926_v9  ;;  %v1023_v4 = vadd.f32 %v1022_v40, %v1021_v17  ;;  %v925_v38 = vsel %vm733_vm2, %v1926_v9, 0.0 }
  0xfb   : > { %713 = vst.msk [vmem:[%s1619_s25 + $0x30] sm:$0xf] %vm636_vm1, %v681_v59  ;;  %v852_v59 = vsel %vm733_vm2, %v812_v30, 0.0  ;;  %v922_v19 = vadd.f32 %v921_v39, %v920_v1  ;;  %v2087_v51 = vsel %vm733_vm2, %v1741_v48, 0.0  ;;  %v856_v17 = vsel %vm733_vm2, %v814_v50, 0.0 }
  0xfc   : > { %728 = vst.msk [vmem:[%s1619_s25 + $0x6c] sm:$0xf] %vm636_vm1, %v696_v32  ;;  %v853_v30 = vadd.f32 %v852_v59, %v851_v47  ;;  %v754_v47 = vadd.f32 %v753_v24, %v752_v31  ;;  %v1025_v34 = vadd.f32 %v1024_v14, %v1023_v4  ;;  %v815_v8 = vmul.f32 %v2003_v22, %v2003_v22 }
  0xfd   : > { %v924_v12 = vadd.f32 %v923_v13, %v922_v19  ;;  %v985_v9 = vmul.f32 %v2005_v27, %v2005_v27  ;;  %v757_v31 = vsel %vm733_vm2, %v2003_v22, 0.0 }
  0xfe   : > { %v2050_v58 = vpop.f32.mrf.mxu2  ;;  %v2052_v28 = vpop.f32.mrf.mxu3  ;;  %v855_v1 = vadd.f32 %v854_v0, %v853_v30  ;;  %v756_v59 = vadd.f32 %v755_v26, %v754_v47  ;;  %v858_v4 = vsel %vm733_vm2, %v815_v8, 0.0 }
  0xff   : > { %v459_v63 = vpop.f32.mrf.mxu0  ;;  %v556_v32 = vpop.f32.mrf.mxu1  ;;  %v632_v16 = vpack.c.bf16 %v2050_v58, %v2050_v58  ;;  %v697_v62 = vpack.c.bf16 %v2052_v28, %v2052_v28  ;;  %v926_v39 = vadd.f32 %v925_v38, %v924_v12 }
 0x100   : > { %v617_v18 = vpack.c.bf16 %v459_v63, %v459_v63  ;;  %v682_v46 = vpack.c.bf16 %v556_v32, %v556_v32  ;;  %v986_v24 = vmul.f32 %v556_v32, %v556_v32  ;;  %v857_v30 = vadd.f32 %v856_v17, %v855_v1 }
 0x101   : > { %665 = vst.msk [vmem:[%s1613_s16 + $0x70] sm:$0xf] %vm636_vm1, %v632_v16  ;;  %v1026_v16 = vsel %vm733_vm2, %v984_v35, 0.0  ;;  %v759_v26 = vsel %vm733_vm2, %v459_v63, 0.0  ;;  %v758_v38 = vadd.f32 %v757_v31, %v756_v59  ;;  %v929_v1 = vsel %vm733_vm2, %v556_v32, 0.0 }
 0x102   : > { %650 = vst.msk [vmem:[%s1613_s16 + $0x34] sm:$0xf] %vm636_vm1, %v617_v18  ;;  %v1027_v35 = vadd.f32 %v1026_v16, %v1025_v34  ;;  %v1030_v34 = vsel %vm733_vm2, %v986_v24, 0.0  ;;  %v824_v32 = vmul.f32 %v1741_v48, %v1741_v48  ;;  %v825_v31 = vmul.f32 %v1765_v56, %v1765_v56 }
 0x103   : > { %714 = vst.msk [vmem:[%s1619_s25 + $0x34] sm:$0xf] %vm636_vm1, %v682_v46  ;;  %v927_v46 = vsel %vm733_vm2, %v2005_v27, 0.0  ;;  %v1028_v27 = vsel %vm733_vm2, %v985_v9, 0.0 }
 0x104   : > { %729 = vst.msk [vmem:[%s1619_s25 + $0x70] sm:$0xf] %vm636_vm1, %v697_v62  ;;  %v816_v62 = vmul.f32 %v459_v63, %v459_v63  ;;  %v928_v47 = vadd.f32 %v927_v46, %v926_v39  ;;  %v859_v63 = vadd.f32 %v858_v4, %v857_v30  ;;  %v1029_v16 = vadd.f32 %v1028_v27, %v1027_v35 }
 0x105   : > { %v994_v39 = vmul.f32 %v1743_v49, %v1743_v49 }
 0x106   : > { %v2099_v40 = vpop.f32.mrf.mxu2  ;;  %v2101_v18 = vpop.f32.mrf.mxu3  ;;  %v860_v17 = vsel %vm733_vm2, %v816_v62, 0.0  ;;  %v930_v46 = vadd.f32 %v929_v1, %v928_v47  ;;  %v1031_v24 = vadd.f32 %v1030_v34, %v1029_v16  ;;  %v876_v34 = vsel %vm733_vm2, %v824_v32, 0.0 }
 0x107   : > { %2344 = vst [vmem:[#allocation8_spill] sm:$0xff] %v2101_v18  ;;  %v462_v0 = vpop.f32.mrf.mxu0  ;;  %v559_v13 = vpop.f32.mrf.mxu1  ;;  %v633_v50 = vpack.c.bf16 %v2099_v40, %v2099_v40  ;;  %v698_v14 = vpack.c.bf16 %v2101_v18, %v2101_v18  ;;  %v760_v18 = vadd.f32 %v759_v26, %v758_v38  ;;  %v861_v62 = vadd.f32 %v860_v17, %v859_v63 }
 0x108   : > { %v618_v19 = vpack.c.bf16 %v462_v0, %v462_v0  ;;  %v683_v22 = vpack.c.bf16 %v559_v13, %v559_v13  ;;  %v817_v12 = vmul.f32 %v462_v0, %v462_v0  ;;  %v761_v8 = vsel %vm733_vm2, %v462_v0, 0.0 }
 0x109   : > { %666 = vst.msk [vmem:[%s1613_s16 + $0x74] sm:$0xf] %vm636_vm1, %v633_v50  ;;  %v987_v9 = vmul.f32 %v559_v13, %v559_v13  ;;  %v931_v59 = vsel %vm733_vm2, %v559_v13, 0.0  ;;  %v762_v0 = vadd.f32 %v761_v8, %v760_v18  ;;  %v945_v16 = vsel %vm733_vm2, %v1743_v49, 0.0 }
 0x10a   : > { %651 = vst.msk [vmem:[%s1613_s16 + $0x38] sm:$0xf] %vm636_vm1, %v618_v19  ;;  %v862_v50 = vsel %vm733_vm2, %v817_v12, 0.0  ;;  %v932_v19 = vadd.f32 %v931_v59, %v930_v46  ;;  %v995_v32 = vmul.f32 %v1767_v57, %v1767_v57  ;;  %v777_v49 = vsel %vm733_vm2, %v1765_v56, 0.0 }
 0x10b   : > { %715 = vst.msk [vmem:[%s1619_s25 + $0x38] sm:$0xf] %vm636_vm1, %v683_v22  ;;  %v1032_v48 = vsel %vm733_vm2, %v987_v9, 0.0  ;;  %v863_v47 = vadd.f32 %v862_v50, %v861_v62 }
 0x10c   : > { %730 = vst.msk [vmem:[%s1619_s25 + $0x74] sm:$0xf] %vm636_vm1, %v698_v14  ;;  %v1033_v8 = vadd.f32 %v1032_v48, %v1031_v24 }
 0x10e   : > { %v2132_v30 = vpop.f32.mrf.mxu2  ;;  %v2134_v13 = vpop.f32.mrf.mxu3 }
 0x10f   : > { %v464_v22 = vpop.f32.mrf.mxu0  ;;  %v561_v14 = vpop.f32.mrf.mxu1  ;;  %v634_v35 = vpack.c.bf16 %v2132_v30, %v2132_v30  ;;  %v699_v4 = vpack.c.bf16 %v2134_v13, %v2134_v13 }
 0x110   : > { %v619_v18 = vpack.c.bf16 %v464_v22, %v464_v22  ;;  %v763_v27 = vsel %vm733_vm2, %v464_v22, 0.0  ;;  %v818_v26 = vmul.f32 %v464_v22, %v464_v22  ;;  %v684_v38 = vpack.c.bf16 %v561_v14, %v561_v14 }
 0x111   : > { %v764_v1 = vadd.f32 %v763_v27, %v762_v0  ;;  %v933_v12 = vsel %vm733_vm2, %v561_v14, 0.0  ;;  %v988_v17 = vmul.f32 %v561_v14, %v561_v14  ;;  %667 = vst.msk [vmem:[%s1613_s16 + $0x78] sm:$0xf] %vm636_vm1, %v634_v35  ;;  %v1046_v0 = vsel %vm733_vm2, %v994_v39, 0.0 }
 0x112   : > { %652 = vst.msk [vmem:[%s1613_s16 + $0x3c] sm:$0xf] %vm636_vm1, %v619_v18  ;;  %v864_v9 = vsel %vm733_vm2, %v818_v26, 0.0  ;;  %v934_v63 = vadd.f32 %v933_v12, %v932_v19  ;;  %v947_v39 = vsel %vm733_vm2, %v1767_v57, 0.0  ;;  %v826_v22 = vmul.f32 %v1789_v2, %v1789_v2 }
 0x113   : > { %v766_v59 = vadd.f32 %v1867_v42, %v764_v1  ;;  %v865_v46 = vadd.f32 %v864_v9, %v863_v47  ;;  %716 = vst.msk [vmem:[%s1619_s25 + $0x3c] sm:$0xf] %vm636_vm1, %v684_v38  ;;  %v1034_v62 = vsel %vm733_vm2, %v988_v17, 0.0  ;;  %v878_v42 = vsel %vm733_vm2, %v825_v31, 0.0 }
 0x114   : > { %v936_v24 = vadd.f32 %v1878_v45, %v934_v63  ;;  %v1035_v50 = vadd.f32 %v1034_v62, %v1033_v8  ;;  %731 = vst.msk [vmem:[%s1619_s25 + $0x78] sm:$0xf] %vm636_vm1, %v699_v4  ;;  %v779_v27 = vsel %vm733_vm2, %v1789_v2, 0.0  ;;  %v880_v38 = vsel %vm733_vm2, %v826_v22, 0.0  ;;  %v2347_v22 = vld [vmem:[#allocation7_spill] sm:$0xff] }
 0x115   : > { %v768_v19 = vadd.f32 %v1889_v23, %v766_v59  ;;  %v867_v48 = vadd.f32 %v1874_v44, %v865_v46  ;;  %v996_v23 = vmul.f32 %v1791_v3, %v1791_v3  ;;  %v949_v2 = vsel %vm733_vm2, %v1791_v3, 0.0 }
 0x116   : > { %v938_v45 = vadd.f32 %v1896_v55, %v936_v24  ;;  %v1037_v14 = vadd.f32 %v1881_v52, %v1035_v50  ;;  %v2172_v35 = vpop.f32.mrf.mxu2  ;;  %v2174_v56 = vpop.f32.mrf.mxu3  ;;  %v1048_v55 = vsel %vm733_vm2, %v995_v32, 0.0  ;;  %v781_v12 = vsel %vm733_vm2, %v1813_v10, 0.0  ;;  %v2346_v24 = vld [vmem:[#allocation6_spill] sm:$0xff] }
 0x117   : > { %v770_v44 = vadd.f32 %v1905_v61, %v768_v19  ;;  %v869_v57 = vadd.f32 %v1892_v54, %v867_v48  ;;  %v635_v31 = vpack.c.bf16 %v2172_v35, %v2172_v35  ;;  %v700_v18 = vpack.c.bf16 %v2174_v56, %v2174_v56 }
 0x118   : > { %v940_v4 = vadd.f32 %v1920_v7, %v938_v45  ;;  %v1039_v52 = vadd.f32 %v1901_v60, %v1037_v14  ;;  %v827_v61 = vmul.f32 %v1813_v10, %v1813_v10  ;;  %v997_v60 = vmul.f32 %v1815_v11, %v1815_v11 }
 0x119   : > { %v772_v54 = vadd.f32 %v1946_v29, %v770_v44  ;;  %v871_v26 = vadd.f32 %v1916_v6, %v869_v57  ;;  %668 = vst.msk [vmem:[%s1613_s16 + $0x7c] sm:$0xf] %vm636_vm1, %v635_v31  ;;  %v1050_v29 = vsel %vm733_vm2, %v996_v23, 0.0  ;;  %v828_v17 = vmul.f32 %v1837_v20, %v1837_v20 }
 0x11a   : > { %v942_v7 = vadd.f32 %v1964_v41, %v940_v4  ;;  %v1041_v47 = vadd.f32 %v1931_v15, %v1039_v52  ;;  %732 = vst.msk [vmem:[%s1619_s25 + $0x7c] sm:$0xf] %vm636_vm1, %v700_v18  ;;  %v882_v8 = vsel %vm733_vm2, %v827_v61, 0.0  ;;  %v998_v3 = vmul.f32 %v1839_v21, %v1839_v21 }
 0x11b   : > { %v774_v6 = vadd.f32 %v1971_v43, %v772_v54  ;;  %v873_v1 = vadd.f32 %v1954_v33, %v871_v26  ;;  %v951_v33 = vsel %vm733_vm2, %v1815_v11, 0.0  ;;  %v1052_v10 = vsel %vm733_vm2, %v997_v60, 0.0 }
 0x11c   : > { %v944_v41 = vadd.f32 %v2042_v5, %v942_v7  ;;  %v1043_v15 = vadd.f32 %v1967_v36, %v1041_v47  ;;  %v783_v36 = vsel %vm733_vm2, %v1837_v20, 0.0  ;;  %v2345_v5 = vld [vmem:[#allocation5_spill] sm:$0xff]  ;;  %v787_v31 = vsel %vm733_vm2, %v2347_v22, 0.0 }
 0x11d   : > { %v776_v9 = vadd.f32 %v2087_v51, %v774_v6  ;;  %v875_v43 = vadd.f32 %v2017_v53, %v873_v1  ;;  %v829_v46 = vmul.f32 %v2345_v5, %v2345_v5  ;;  %v884_v51 = vsel %vm733_vm2, %v828_v17, 0.0 }
 0x11e   : > { %v946_v63 = vadd.f32 %v945_v16, %v944_v41  ;;  %v1045_v59 = vadd.f32 %v2077_v25, %v1043_v15  ;;  %v999_v53 = vmul.f32 %v2346_v24, %v2346_v24  ;;  %v953_v16 = vsel %vm733_vm2, %v1839_v21, 0.0  ;;  %v2348_v41 = vld [vmem:[#allocation8_spill] sm:$0xff] }
 0x11f   : > { %v877_v62 = vadd.f32 %v876_v34, %v875_v43  ;;  %v778_v32 = vadd.f32 %v777_v49, %v776_v9  ;;  %v1054_v25 = vsel %vm733_vm2, %v998_v3, 0.0  ;;  %v785_v20 = vsel %vm733_vm2, %v2345_v5, 0.0 }
 0x120   : > { %v1047_v50 = vadd.f32 %v1046_v0, %v1045_v59  ;;  %v948_v11 = vadd.f32 %v947_v39, %v946_v63  ;;  %v830_v34 = vmul.f32 %v2347_v22, %v2347_v22  ;;  %v886_v14 = vsel %vm733_vm2, %v829_v46, 0.0 }
 0x121   : > { %v780_v19 = vadd.f32 %v779_v27, %v778_v32  ;;  %v879_v48 = vadd.f32 %v878_v42, %v877_v62  ;;  %v955_v0 = vsel %vm733_vm2, %v2346_v24, 0.0  ;;  %v1056_v21 = vsel %vm733_vm2, %v999_v53, 0.0 }
 0x122   : > { %v950_v49 = vadd.f32 %v949_v2, %v948_v11  ;;  %v1049_v45 = vadd.f32 %v1048_v55, %v1047_v50  ;;  %v1000_v42 = vmul.f32 %v1995_v37, %v1995_v37  ;;  %v831_v55 = vmul.f32 %v2050_v58, %v2050_v58 }
 0x123   : > { %v782_v39 = vadd.f32 %v781_v12, %v780_v19  ;;  %v881_v23 = vadd.f32 %v880_v38, %v879_v48  ;;  %v888_v18 = vsel %vm733_vm2, %v830_v34, 0.0  ;;  %v1001_v61 = vmul.f32 %v2052_v28, %v2052_v28 }
 0x124   : > { %v952_v44 = vadd.f32 %v951_v33, %v950_v49  ;;  %v1051_v57 = vadd.f32 %v1050_v29, %v1049_v45  ;;  %v957_v26 = vsel %vm733_vm2, %v1995_v37, 0.0  ;;  %v832_v7 = vmul.f32 %v2099_v40, %v2099_v40 }
 0x125   : > { %v784_v4 = vadd.f32 %v783_v36, %v782_v39  ;;  %v883_v52 = vadd.f32 %v882_v8, %v881_v23  ;;  %v1058_v47 = vsel %vm733_vm2, %v1000_v42, 0.0  ;;  %v789_v2 = vsel %vm733_vm2, %v2050_v58, 0.0 }
 0x126   : > { %v954_v27 = vadd.f32 %v953_v16, %v952_v44  ;;  %v1053_v54 = vadd.f32 %v1052_v10, %v1051_v57  ;;  %v890_v17 = vsel %vm733_vm2, %v831_v55, 0.0  ;;  %v1002_v15 = vmul.f32 %v2348_v41, %v2348_v41 }
 0x127   : > { %v786_v38 = vadd.f32 %v785_v20, %v784_v4  ;;  %v885_v60 = vadd.f32 %v884_v51, %v883_v52  ;;  %v959_v8 = vsel %vm733_vm2, %v2052_v28, 0.0  ;;  %v1060_v9 = vsel %vm733_vm2, %v1001_v61, 0.0 }
 0x128   : > { %v956_v29 = vadd.f32 %v955_v0, %v954_v27  ;;  %v1055_v6 = vadd.f32 %v1054_v25, %v1053_v54  ;;  %v791_v58 = vsel %vm733_vm2, %v2099_v40, 0.0  ;;  %v892_v10 = vsel %vm733_vm2, %v832_v7, 0.0 }
 0x129   : > { %v788_v1 = vadd.f32 %v787_v31, %v786_v38  ;;  %v887_v12 = vadd.f32 %v886_v14, %v885_v60  ;;  %v961_v36 = vsel %vm733_vm2, %v2348_v41, 0.0  ;;  %v833_v5 = vmul.f32 %v2132_v30, %v2132_v30 }
 0x12a   : > { %v958_v37 = vadd.f32 %v957_v26, %v956_v29  ;;  %v1057_v3 = vadd.f32 %v1056_v21, %v1055_v6  ;;  %v1062_v62 = vsel %vm733_vm2, %v1002_v15, 0.0  ;;  %v1003_v32 = vmul.f32 %v2134_v13, %v2134_v13 }
 0x12b   : > { %v790_v43 = vadd.f32 %v789_v2, %v788_v1  ;;  %v889_v33 = vadd.f32 %v888_v18, %v887_v12  ;;  %v793_v40 = vsel %vm733_vm2, %v2132_v30, 0.0  ;;  %v834_v53 = vmul.f32 %v2172_v35, %v2172_v35 }
 0x12c   : > { %v960_v63 = vadd.f32 %v959_v8, %v958_v37  ;;  %v1059_v59 = vadd.f32 %v1058_v47, %v1057_v3  ;;  %v963_v16 = vsel %vm733_vm2, %v2134_v13, 0.0  ;;  %v1004_v25 = vmul.f32 %v2174_v56, %v2174_v56 }
 0x12d   : > { %v891_v46 = vadd.f32 %v890_v17, %v889_v33  ;;  %v792_v28 = vadd.f32 %v791_v58, %v790_v43  ;;  %v894_v48 = vsel %vm733_vm2, %v833_v5, 0.0  ;;  %v795_v22 = vsel %vm733_vm2, %v2172_v35, 0.0 }
 0x12e   : > { %v1061_v51 = vadd.f32 %v1060_v9, %v1059_v59  ;;  %v962_v24 = vadd.f32 %v961_v36, %v960_v63  ;;  %v1064_v30 = vsel %vm733_vm2, %v1003_v32, 0.0  ;;  %v965_v45 = vsel %vm733_vm2, %v2174_v56, 0.0 }
 0x12f   : > { %v893_v50 = vadd.f32 %v892_v10, %v891_v46  ;;  %v794_v11 = vadd.f32 %v793_v40, %v792_v28  ;;  %v896_v13 = vsel %vm733_vm2, %v834_v53, 0.0  ;;  %v1066_v21 = vsel %vm733_vm2, %v1004_v25, 0.0 }
 0x130   : > { %v1063_v19 = vadd.f32 %v1062_v62, %v1061_v51  ;;  %v964_v20 = vadd.f32 %v963_v16, %v962_v24 }
 0x131   : > { %v895_v34 = vadd.f32 %v894_v48, %v893_v50  ;;  %v796_v49 = vadd.f32 %v795_v22, %v794_v11 }
 0x132   : > { %v1065_v14 = vadd.f32 %v1064_v30, %v1063_v19  ;;  %v966_v0 = vadd.f32 %v965_v45, %v964_v20 }
 0x133   : > { %v797_v39 = vrot.slane %v796_v49, 4  ;;  %v897_v23 = vadd.f32 %v896_v13, %v895_v34 }
 0x134   : > { %v967_v42 = vrot.slane %v966_v0, 4  ;;  %v1067_v35 = vadd.f32 %v1066_v21, %v1065_v14 }
 0x135   : > { %v798_v44 = vadd.f32 %v797_v39, %v796_v49  ;;  %v898_v57 = vrot.slane %v897_v23, 4 }
 0x136   : > { %v968_v31 = vadd.f32 %v967_v42, %v966_v0  ;;  %v1068_v4 = vrot.slane %v1067_v35, 4 }
 0x137   : > { %v799_v55 = vrot.slane %v798_v44, 2  ;;  %v899_v52 = vadd.f32 %v898_v57, %v897_v23 }
 0x138   : > { %v969_v56 = vrot.slane %v968_v31, 2  ;;  %v1069_v18 = vadd.f32 %v1068_v4, %v1067_v35 }
 0x139   : > { %v800_v27 = vadd.f32 %v799_v55, %v798_v44  ;;  %v900_v61 = vrot.slane %v899_v52, 2 }
 0x13a   : > { %v970_v54 = vadd.f32 %v969_v56, %v968_v31  ;;  %v1070_v26 = vrot.slane %v1069_v18, 2 }
 0x13b   : > { %v801_v38 = vrot.slane %v800_v27, 1  ;;  %v901_v60 = vadd.f32 %v900_v61, %v899_v52 }
 0x13c   : > { %v971_v7 = vrot.slane %v970_v54, 1  ;;  %v1071_v47 = vadd.f32 %v1070_v26, %v1069_v18 }
 0x13d   : > { %v902_v2 = vrot.slane %v901_v60, 1  ;;  %v802_v6 = vadd.f32 %v801_v38, %v800_v27 }
 0x13e   : > { %v1072_v29 = vrot.slane %v1071_v47, 1  ;;  %v972_v12 = vadd.f32 %v971_v7, %v970_v54 }
 0x13f   : > { %v903_v1 = vadd.f32 %v902_v2, %v901_v60 }
 0x140   : > { %v1073_v17 = vadd.f32 %v1072_v29, %v1071_v47 }
 0x141   : > { %v1075_v41 = vsel %vm1074_vm3, %v802_v6, %v903_v1 }
 0x142   : > { %v1077_v15 = vsel %vm1076_vm4, %v1075_v41, %v972_v12 }
 0x143   : > { %v1079_v37 = vsel %vm1078_vm5, %v1077_v15, %v1073_v17 }
 0x144   : > { %1080 = vst.msk [vmem:[%s232_s10] sm:$0xf] %vm636_vm1, %v1079_v37 }
 0x145   : > { %1430 = shalt.err (!%p1427_p3)
}
 0x146   : > { %1364 = dma.vmem_to_hbm [thread:$0]  (%p1535_p5), %s1111_s11, 64, %s1113_s22, %s1092_s12  }
 0x147 PF: > { %p1370_p4 = scmp.ge.s32.totalorder %s1465_s21, 2  ;;  %s1140_s26 = sand.u32 1, %s1453_s18  }
 0x148   : > { %s1141_s30 = scalar_lea.sflag [#allocation3], %s1140_s26 }
 0x149   : > { %p1367_p7 = pnand %p1370_p4, %p1539_p6 }
 0x14b   : > { %p1368_p8 = pneg %p1367_p7 }
 0x14d   : > { %1448 = dma.done.wait (%p1368_p8), %s1141_s30, 64  }
 0x14e   : > { %1450 = vsyncadd (%p1368_p8), %s1141_s30, 4294967232  ;;  %p16_p9 = scmp.ge.s32.totalorder %s1522_s24, 4   ;;  %s2349_s18 = smov %s1457_s19 }
 0x14f   : > { %s2350_s19 = smov %s1461_s20  ;;  %s2351_s20 = smov %s1533_s27 }
 0x150   : > { %s2352_s21 = smov %s1522_s24  ;;  %18 = sbr.rel (!%p16_p9) target bundleno = 3 (0x3), region = 91 }
 0x155   :  { %1147 = vsyncpa [#allocation3], 1 }
 0x156   :  { %1149 = vsyncpa [#allocation3 + $0x1], 1 }

</bundles_post_ra>
